<compile_context>
chip_gen: v6e
topology: v6e:2x2x1
jax: 0.10.0
libtpu: 0.0.40
codegen_flags: <defaults>
</compile_context>

<pallas_src>
import functools

import jax
import jax.numpy as jnp
from jax.experimental import pallas as pl
from jax.experimental.pallas import tpu as pltpu


def _round_up(v, m):
    return ((v + m - 1) // m) * m


def _layer_norm_kernel(x_ref, w_ref, b_ref, o_ref, *, eps):
    """Plain path: normalize each row of a (tm, D) tile over the full last dim."""
    x = x_ref[...].astype(jnp.float32)
    mean = jnp.mean(x, axis=-1, keepdims=True)
    xc = x - mean
    var = jnp.mean(xc * xc, axis=-1, keepdims=True)
    inv = jax.lax.rsqrt(var + eps)
    w = w_ref[...].astype(jnp.float32)
    b = b_ref[...].astype(jnp.float32)
    o_ref[...] = (xc * inv * w + b).astype(o_ref.dtype)


def _layer_norm_kernel_folded(x_ref, w_ref, b_ref, seg_ref, segt_ref, o_ref,
                              *, eps, hidden):
    """Lane-dense path: each physical row of the (tm, k*hidden) tile holds k
    logical rows of width `hidden`.  Per-segment mean/var are computed with a
    0/1 segment matrix on the MXU (HIGHEST precision => f32-exact) so loads
    and stores stay 128-lane dense (no masked vst.msk partial stores)."""
    x = x_ref[...].astype(jnp.float32)
    seg = seg_ref[...]      # (k*hidden, k), 0/1 in f32
    seg_t = segt_ref[...]   # (k, k*hidden)
    inv_h = 1.0 / float(hidden)
    hi = jax.lax.Precision.HIGHEST

    sums = jnp.dot(x, seg, precision=hi, preferred_element_type=jnp.float32)
    mean = sums * inv_h                                            # (tm, k)
    mean_b = jnp.dot(mean, seg_t, precision=hi,
                     preferred_element_type=jnp.float32)           # (tm, k*hidden)
    xc = x - mean_b
    var = jnp.dot(xc * xc, seg, precision=hi,
                  preferred_element_type=jnp.float32) * inv_h      # (tm, k)
    inv = jax.lax.rsqrt(var + eps)
    inv_b = jnp.dot(inv, seg_t, precision=hi,
                    preferred_element_type=jnp.float32)            # (tm, k*hidden)

    w = w_ref[...].astype(jnp.float32)
    b = b_ref[...].astype(jnp.float32)
    o_ref[...] = (xc * inv_b * w + b).astype(o_ref.dtype)


# ~36 MiB of double-buffered in+out tiles: big enough to sit near the HBM
# roofline on v5e/v6e, small enough to fit v7x's 64 MiB physical VMEM.
_VMEM_TILE_BUDGET = 36 * 1024 * 1024
_DEFAULT_VMEM_LIMIT = 64 * 1024 * 1024


def _pick_tm(rows, d, itemsize, block_rows):
    sublane = max(8, 32 // itemsize)          # 8 f32 / 16 bf16 / 32 int8-fp8
    if rows <= sublane:
        return rows                           # block == full dim, still legal
    # Double-buffered input + output tiles, plus an f32-upcast tile of
    # headroom for sub-32-bit inputs.
    f32_headroom = 4 if itemsize < 4 else 0
    bytes_per_row = d * (4 * itemsize + f32_headroom)
    tm_cap = max(sublane, _VMEM_TILE_BUDGET // bytes_per_row)
    tm = min(block_rows, tm_cap)
    tm = max(sublane, (tm // sublane) * sublane)
    if rows <= tm:
        # Keep at least 2 grid steps so both v7x TensorCores get work.
        tm = max(sublane, _round_up(pl.cdiv(rows, 2), sublane))
    return tm


def _call_layer_norm(kernel, inputs, in_specs, rows, d, tm, out_dtype,
                     vmem_limit_bytes):
    grid = (pl.cdiv(rows, tm),)
    return pl.pallas_call(
        kernel,
        out_shape=jax.ShapeDtypeStruct((rows, d), out_dtype),
        grid_spec=pltpu.PrefetchScalarGridSpec(
            num_scalar_prefetch=0,
            grid=grid,
            in_specs=in_specs,
            out_specs=pl.BlockSpec((tm, d), lambda i: (i, 0)),
        ),
        compiler_params=pltpu.CompilerParams(
            dimension_semantics=("parallel",),
            vmem_limit_bytes=vmem_limit_bytes,
        ),
    )(*inputs)


def fused_layer_norm(x, weight, bias, eps=1e-5, block_rows=1024,
                     vmem_limit_bytes=_DEFAULT_VMEM_LIMIT):
    """LayerNorm over the last dim of x, matching FusedLayerNorm.forward."""
    orig_shape = x.shape
    hidden = orig_shape[-1]
    assert weight.shape == (hidden,) and bias.shape == (hidden,)

    rows = 1
    for d in orig_shape[:-1]:
        rows *= d

    itemsize = jnp.dtype(x.dtype).itemsize

    # Lane-dense repack: if hidden divides 128, fold k = 128 // hidden logical
    # rows into one 128-lane physical row (a free row-major reshape).
    fold = (hidden < 128 and 128 % hidden == 0
            and rows % (128 // hidden) == 0)

    if fold:
        k = 128 // hidden
        rows2 = rows // k
        d2 = k * hidden
        x2 = x.reshape(rows2, d2)
        w2 = jnp.tile(weight, k).reshape(1, d2)
        b2 = jnp.tile(bias, k).reshape(1, d2)
        seg = (jnp.arange(d2, dtype=jnp.int32)[:, None] // hidden
               == jnp.arange(k, dtype=jnp.int32)[None, :]).astype(jnp.float32)
        seg_t = seg.T
        tm = _pick_tm(rows2, d2, itemsize, block_rows)
        kern = functools.partial(_layer_norm_kernel_folded, eps=eps,
                                 hidden=hidden)
        in_specs = [
            pl.BlockSpec((tm, d2), lambda i: (i, 0)),
            pl.BlockSpec((1, d2), lambda i: (0, 0)),
            pl.BlockSpec((1, d2), lambda i: (0, 0)),
            pl.BlockSpec((d2, k), lambda i: (0, 0)),
            pl.BlockSpec((k, d2), lambda i: (0, 0)),
        ]
        out = _call_layer_norm(kern, (x2, w2, b2, seg, seg_t), in_specs,
                               rows2, d2, tm, x.dtype, vmem_limit_bytes)
    else:
        x2 = x.reshape(rows, hidden)
        w2 = weight.reshape(1, hidden)
        b2 = bias.reshape(1, hidden)
        tm = _pick_tm(rows, hidden, itemsize, block_rows)
        kern = functools.partial(_layer_norm_kernel, eps=eps)
        in_specs = [
            pl.BlockSpec((tm, hidden), lambda i: (i, 0)),
            pl.BlockSpec((1, hidden), lambda i: (0, 0)),
            pl.BlockSpec((1, hidden), lambda i: (0, 0)),
        ]
        out = _call_layer_norm(kern, (x2, w2, b2), in_specs,
                               rows, hidden, tm, x.dtype, vmem_limit_bytes)

    return out.reshape(orig_shape)


def _reference_layer_norm(x, weight, bias, eps):
    x32 = x.astype(jnp.float32)
    mean = jnp.mean(x32, axis=-1, keepdims=True)
    var = jnp.mean((x32 - mean) ** 2, axis=-1, keepdims=True)
    y = (x32 - mean) * jax.lax.rsqrt(var + eps)
    y = y * weight.astype(jnp.float32) + bias.astype(jnp.float32)
    return y.astype(x.dtype)


if __name__ == "__main__":
    root = jax.random.PRNGKey(0)
    k1, k2, k3, k4 = jax.random.split(root, 4)

    # Case 1: batch=2, seq=8, hidden=32 -> lane-dense folded path
    # (parameters at their reset_parameters() init: ones / zeros).
    hidden1 = 32
    x1 = jax.random.normal(k1, (2, 8, hidden1), dtype=jnp.float32)
    w1 = jnp.ones((hidden1,), dtype=jnp.float32)
    b1 = jnp.zeros((hidden1,), dtype=jnp.float32)
    out1 = jax.block_until_ready(fused_layer_norm(x1, w1, b1, eps=1e-5))
    ref1 = _reference_layer_norm(x1, w1, b1, 1e-5)
    assert out1.shape == x1.shape
    assert jnp.allclose(out1, ref1, atol=1e-4, rtol=1e-4), "folded path mismatch"

    # Case 2: hidden=256 with a ragged row grid -> plain path, partial last
    # block handled by Pallas (no pad / slice copies), non-trivial affine.
    hidden2 = 256
    x2 = jax.random.normal(k2, (5, 8, hidden2), dtype=jnp.float32)
    w2 = 1.0 + 0.1 * jax.random.normal(k3, (hidden2,), dtype=jnp.float32)
    b2 = 0.1 * jax.random.normal(k4, (hidden2,), dtype=jnp.float32)
    out2 = jax.block_until_ready(fused_layer_norm(x2, w2, b2, eps=1e-5))
    ref2 = _reference_layer_norm(x2, w2, b2, 1e-5)
    assert out2.shape == x2.shape
    assert jnp.allclose(out2, ref2, atol=1e-4, rtol=1e-4), "plain path mismatch"

    print("KERNEL_OK")
</pallas_src>

<mosaic_0001>
module attributes {stable_mosaic.version = 11 : i64} {
  func.func @_layer_norm_kernel_folded(%arg0: i32, %arg1: memref<4x128xf32, #tpu.memory_space<vmem>>, %arg2: memref<1x128xf32, #tpu.memory_space<vmem>>, %arg3: memref<1x128xf32, #tpu.memory_space<vmem>>, %arg4: memref<128x4xf32, #tpu.memory_space<vmem>>, %arg5: memref<4x128xf32, #tpu.memory_space<vmem>>, %arg6: memref<4x128xf32, #tpu.memory_space<vmem>>) attributes {dimension_semantics = [#tpu.dimension_semantics<parallel>], iteration_bounds = array<i64: 1>, scalar_prefetch = 0 : i64, scratch_operands = 0 : i64, tpu.core_type = #tpu.core_type<tc>, window_params = [{transform_indices = @transform_0, window_bounds = array<i64: 4, 128>}, {pipeline_mode = #tpu.pipeline_mode<synchronous>, transform_indices = @transform_1, window_bounds = array<i64: 1, 128>}, {pipeline_mode = #tpu.pipeline_mode<synchronous>, transform_indices = @transform_2, window_bounds = array<i64: 1, 128>}, {pipeline_mode = #tpu.pipeline_mode<synchronous>, transform_indices = @transform_3, window_bounds = array<i64: 128, 4>}, {pipeline_mode = #tpu.pipeline_mode<synchronous>, transform_indices = @transform_4, window_bounds = array<i64: 4, 128>}, {transform_indices = @transform_5, window_bounds = array<i64: 4, 128>}]} {
    %c0 = arith.constant 0 : index
    %c0_0 = arith.constant 0 : index
    %0 = vector.load %arg1[%c0, %c0_0] : memref<4x128xf32, #tpu.memory_space<vmem>>, vector<4x128xf32>
    %c0_1 = arith.constant 0 : index
    %c0_2 = arith.constant 0 : index
    %1 = vector.load %arg4[%c0_1, %c0_2] : memref<128x4xf32, #tpu.memory_space<vmem>>, vector<128x4xf32>
    %c0_3 = arith.constant 0 : index
    %c0_4 = arith.constant 0 : index
    %2 = vector.load %arg5[%c0_3, %c0_4] : memref<4x128xf32, #tpu.memory_space<vmem>>, vector<4x128xf32>
    %cst = arith.constant dense<0.000000e+00> : vector<4x4xf32>
    %3 = tpu.matmul %0, %1, %cst {dimension_numbers = #tpu.dot_dimension_numbers<[1], [0], [0], [1], [0, 0, 1, 1], [], []>, precision = #tpu.contract_precision<fp32>} : vector<4x128xf32>, vector<128x4xf32>, vector<4x4xf32> -> vector<4x4xf32>
    %cst_5 = arith.constant 3.125000e-02 : f32
    %4 = vector.broadcast %cst_5 : f32 to vector<4x4xf32>
    %5 = arith.mulf %3, %4 : vector<4x4xf32>
    %cst_6 = arith.constant dense<0.000000e+00> : vector<4x128xf32>
    %6 = tpu.matmul %5, %2, %cst_6 {dimension_numbers = #tpu.dot_dimension_numbers<[1], [0], [0], [1], [0, 0, 1, 1], [], []>, precision = #tpu.contract_precision<fp32>} : vector<4x4xf32>, vector<4x128xf32>, vector<4x128xf32> -> vector<4x128xf32>
    %7 = arith.subf %0, %6 : vector<4x128xf32>
    %8 = arith.mulf %7, %7 : vector<4x128xf32>
    %cst_7 = arith.constant dense<0.000000e+00> : vector<4x4xf32>
    %9 = tpu.matmul %8, %1, %cst_7 {dimension_numbers = #tpu.dot_dimension_numbers<[1], [0], [0], [1], [0, 0, 1, 1], [], []>, precision = #tpu.contract_precision<fp32>} : vector<4x128xf32>, vector<128x4xf32>, vector<4x4xf32> -> vector<4x4xf32>
    %cst_8 = arith.constant 3.125000e-02 : f32
    %10 = vector.broadcast %cst_8 : f32 to vector<4x4xf32>
    %11 = arith.mulf %9, %10 : vector<4x4xf32>
    %cst_9 = arith.constant 9.99999974E-6 : f32
    %12 = vector.broadcast %cst_9 : f32 to vector<4x4xf32>
    %13 = arith.addf %11, %12 : vector<4x4xf32>
    %14 = math.rsqrt %13 : vector<4x4xf32>
    %cst_10 = arith.constant dense<0.000000e+00> : vector<4x128xf32>
    %15 = tpu.matmul %14, %2, %cst_10 {dimension_numbers = #tpu.dot_dimension_numbers<[1], [0], [0], [1], [0, 0, 1, 1], [], []>, precision = #tpu.contract_precision<fp32>} : vector<4x4xf32>, vector<4x128xf32>, vector<4x128xf32> -> vector<4x128xf32>
    %c0_11 = arith.constant 0 : index
    %c0_12 = arith.constant 0 : index
    %16 = vector.load %arg2[%c0_11, %c0_12] : memref<1x128xf32, #tpu.memory_space<vmem>>, vector<1x128xf32>
    %c0_13 = arith.constant 0 : index
    %c0_14 = arith.constant 0 : index
    %17 = vector.load %arg3[%c0_13, %c0_14] : memref<1x128xf32, #tpu.memory_space<vmem>>, vector<1x128xf32>
    %18 = arith.mulf %7, %15 : vector<4x128xf32>
    %19 = vector.broadcast %16 : vector<1x128xf32> to vector<4x128xf32>
    %20 = arith.mulf %18, %19 : vector<4x128xf32>
    %21 = vector.broadcast %17 : vector<1x128xf32> to vector<4x128xf32>
    %22 = arith.addf %20, %21 : vector<4x128xf32>
    %c0_15 = arith.constant 0 : index
    %c0_16 = arith.constant 0 : index
    %23 = vector.load %arg6[%c0_15, %c0_16] : memref<4x128xf32, #tpu.memory_space<vmem>>, vector<4x128xf32>
    tpu.vector_store %arg6[%c0_15, %c0_16], %22 {strides = array<i32>} : memref<4x128xf32, #tpu.memory_space<vmem>>, vector<4x128xf32>,
    return
  }
  func.func @transform_0(%arg0: i32) -> (i32, i32) {
    %c0_i32 = arith.constant 0 : i32
    %c0_i32_0 = arith.constant 0 : i32
    return %arg0, %c0_i32 : i32, i32
  }
  func.func @transform_1(%arg0: i32) -> (i32, i32) {
    %c0_i32 = arith.constant 0 : i32
    %c0_i32_0 = arith.constant 0 : i32
    %c0_i32_1 = arith.constant 0 : i32
    return %c0_i32, %c0_i32_0 : i32, i32
  }
  func.func @transform_2(%arg0: i32) -> (i32, i32) {
    %c0_i32 = arith.constant 0 : i32
    %c0_i32_0 = arith.constant 0 : i32
    %c0_i32_1 = arith.constant 0 : i32
    return %c0_i32, %c0_i32_0 : i32, i32
  }
  func.func @transform_3(%arg0: i32) -> (i32, i32) {
    %c0_i32 = arith.constant 0 : i32
    %c0_i32_0 = arith.constant 0 : i32
    %c0_i32_1 = arith.constant 0 : i32
    return %c0_i32, %c0_i32_0 : i32, i32
  }
  func.func @transform_4(%arg0: i32) -> (i32, i32) {
    %c0_i32 = arith.constant 0 : i32
    %c0_i32_0 = arith.constant 0 : i32
    %c0_i32_1 = arith.constant 0 : i32
    return %c0_i32, %c0_i32_0 : i32, i32
  }
  func.func @transform_5(%arg0: i32) -> (i32, i32) {
    %c0_i32 = arith.constant 0 : i32
    %c0_i32_0 = arith.constant 0 : i32
    return %arg0, %c0_i32 : i32, i32
  }
}

</mosaic_0001>

<bundles_post_ra>
// kernel: tpu_custom_call.1
= control target key start
LH: loop header
LB: loop body
LE: loop exit
PB: predicated region body
PF: predicated region fallthrough
CT: control target
= control target key end

     0   :  { %v3823_v3 = vmov 0.0   ;;  %vm3000_vm0 = vmmov 0   ;;  %s3793_s0 = inlined_call_operand.vmem [shape: f32[4,128], index: 0, kind: input, shape index: {}]   ;;  %s3794_s1 = inlined_call_operand.vmem [shape: f32[1,128], index: 1, kind: input, shape index: {}]   ;;  %s3795_s2 = inlined_call_operand.vmem [shape: f32[1,128], index: 2, kind: input, shape index: {}]   ;;  %s3796_s3 = inlined_call_operand.vmem [shape: f32[128,4], index: 3, kind: input, shape index: {}]   ;;  %s3797_s4 = inlined_call_operand.vmem [shape: f32[4,128], index: 4, kind: input, shape index: {}]   ;;  %s3798_s5 = inlined_call_operand.hbm [shape: f32[4,128], index: 5, kind: output, shape index: {}]  }
   0x1   :  { %v37_v0 = vld [vmem:[%s3796_s3 + $0x78] sm:$0xff]  ;;  %v36_v1 = vld [vmem:[%s3796_s3 + $0x70] sm:$0xff]  ;;  %v35_v2 = vld [vmem:[%s3796_s3 + $0x68] sm:$0xff]  ;;  %2492 = vmatprep.subr.mxu0 %v3823_v3  ;;  %2527 = vmatprep.subr.mxu1 %v3823_v3 }
   0x2   :  { %v3042_v4 = vand.u32 4294901760, %v37_v0  ;;  %v3044_v5 = vand.u32 4294901760, %v36_v1  ;;  %v3046_v6 = vand.u32 4294901760, %v35_v2  ;;  %v34_v7 = vld [vmem:[%s3796_s3 + $0x60] sm:$0xff]  ;;  %v33_v8 = vld [vmem:[%s3796_s3 + $0x58] sm:$0xff]  ;;  %v32_v9 = vld [vmem:[%s3796_s3 + $0x50] sm:$0xff]  ;;  %2524 = vmatprep.mubr.msk.f32.mxu0 %vm3000_vm0, %v3823_v3  ;;  %2559 = vmatprep.mubr.msk.f32.mxu1 %vm3000_vm0, %v3823_v3 }
   0x3   :  { %v3058_v10 = vand.u32 4294901760, %v34_v7  ;;  %v3060_v11 = vand.u32 4294901760, %v33_v8  ;;  %v3062_v12 = vand.u32 4294901760, %v32_v9  ;;  %v31_v13 = vld [vmem:[%s3796_s3 + $0x48] sm:$0xff]  ;;  %v30_v14 = vld [vmem:[%s3796_s3 + $0x40] sm:$0xff]  ;;  %v29_v19 = vld [vmem:[%s3796_s3 + $0x38] sm:$0xff] }
   0x4   :  { %2493 = vmatpush3.msra.mxu0 %v3042_v4  ;;  %v3076_v15 = vsub.f32 %v37_v0, %v3042_v4  ;;  %v3079_v16 = vsub.f32 %v36_v1, %v3044_v5  ;;  %v3081_v17 = vand.u32 4294901760, %v31_v13  ;;  %v3084_v18 = vsub.f32 %v35_v2, %v3046_v6  ;;  %v28_v26 = vld [vmem:[%s3796_s3 + $0x30] sm:$0xff] }
   0x5   :  { %2494 = vmatprep.subr.mxu0 %v3823_v3  ;;  %v3091_v20 = vsub.f32 %v34_v7, %v3058_v10  ;;  %v3094_v21 = vsub.f32 %v33_v8, %v3060_v11  ;;  %v3106_v25 = vand.u32 4294901760, %v30_v14  ;;  %v3115_v28 = vand.u32 4294901760, %v29_v19 }
   0x6   :  { %2495 = vmatpush3.msra.mxu0 %v3044_v5  ;;  %v3098_v22 = vand.u32 4294901760, %v3076_v15  ;;  %v3101_v23 = vand.u32 4294901760, %v3079_v16  ;;  %v3104_v24 = vand.u32 4294901760, %v3084_v18  ;;  %v3121_v30 = vsub.f32 %v32_v9, %v3062_v12 }
   0x7   :  { %2496 = vmatprep.subr.mxu0 %v3823_v3  ;;  %v3113_v27 = vand.u32 4294901760, %v3091_v20  ;;  %v3118_v29 = vand.u32 4294901760, %v3094_v21  ;;  %v3131_v34 = vsub.f32 %v31_v13, %v3081_v17 }
   0x8   :  { %3826 = vst [vmem:[#allocation5_spill] sm:$0xff] %v3098_v22  ;;  %3827 = vst [vmem:[#allocation6_spill] sm:$0xff] %v3101_v23  ;;  %2497 = vmatpush3.msra.mxu0 %v3046_v6  ;;  %v134_v31 = vsub.f32 %v3076_v15, %v3098_v22  ;;  %v141_v32 = vsub.f32 %v3079_v16, %v3101_v23  ;;  %v148_v33 = vsub.f32 %v3084_v18, %v3104_v24 }
   0x9   :  { %3828 = vst [vmem:[#allocation7_spill] sm:$0xff] %v3104_v24  ;;  %3829 = vst [vmem:[#allocation8_spill] sm:$0xff] %v3113_v27 }
   0xa   :  { %3830 = vst [vmem:[#allocation9_spill] sm:$0xff] %v3118_v29 }
   0xb   :  { %10 = vsyncpa [#allocation3], 0  ;;  %2498 = vmatprep.subr.mxu0 %v3823_v3  ;;  %v3134_v35 = vand.u32 4294901760, %v28_v26  ;;  %v27_v36 = vld [vmem:[%s3796_s3 + $0x28] sm:$0xff]  ;;  %v3140_v37 = vand.u32 4294901760, %v134_v31  ;;  %v3142_v38 = vand.u32 4294901760, %v141_v32  ;;  %v155_v39 = vsub.f32 %v3091_v20, %v3113_v27 }
   0xc   :  { %2499 = vmatpush3.msra.mxu0 %v3058_v10  ;;  %v3147_v40 = vand.u32 4294901760, %v3121_v30  ;;  %v26_v41 = vld [vmem:[%s3796_s3 + $0x20] sm:$0xff]  ;;  %v162_v42 = vsub.f32 %v3094_v21, %v3118_v29  ;;  %v3156_v43 = vsub.f32 %v30_v14, %v3106_v25  ;;  %v3160_v44 = vand.u32 4294901760, %v148_v33  ;;  %v25_v49 = vld [vmem:[%s3796_s3 + $0x18] sm:$0xff]  ;;  %v24_v54 = vld [vmem:[%s3796_s3 + $0x10] sm:$0xff]  ;;  %s3001_s30 = smov [#allocation2]  }
   0xd   :  { %2500 = vmatprep.subr.mxu0 %v3823_v3  ;;  %2528 = vmatpush3.msra.mxu1 %v3140_v37  ;;  %v3162_v45 = vand.u32 4294901760, %v27_v36  ;;  %v3165_v46 = vand.u32 4294901760, %v3131_v34  ;;  %v3168_v47 = vsub.f32 %v29_v19, %v3115_v28  ;;  %v3172_v48 = vand.u32 4294901760, %v26_v41  ;;  %v3180_v50 = vld [vmem:[%s3793_s0] sm:$0xf]  ;;  %v23_v60 = vld [vmem:[%s3796_s3 + $0x8] sm:$0xff] }
   0xe   :  { %3831 = vst [vmem:[#allocation10_spill] sm:$0xff] %v3147_v40  ;;  %2501 = vmatpush3.msra.mxu0 %v3060_v11  ;;  %2529 = vmatprep.subr.mxu1 %v3823_v3  ;;  %3833 = vst [vmem:[#allocation12_spill] sm:$0xff] %v3180_v50  ;;  %v3184_v51 = vand.u32 4294901760, %v155_v39  ;;  %v169_v52 = vsub.f32 %v3121_v30, %v3147_v40  ;;  %v3189_v53 = vand.u32 4294901760, %v3156_v43  ;;  %v3199_v56 = vand.u32 4294901760, %v162_v42  ;;  %v22_v7 = vld [vmem:[%s3796_s3] sm:$0xff] }
   0xf   :  { %3832 = vst [vmem:[#allocation11_spill] sm:$0xff] %v3165_v46  ;;  %2502 = vmatprep.subr.mxu0 %v3823_v3  ;;  %2530 = vmatpush3.msra.mxu1 %v3142_v38  ;;  %v3195_v55 = vsub.f32 %v28_v26, %v3134_v35  ;;  %v3202_v57 = vand.u32 4294901760, %v3168_v47  ;;  %v176_v58 = vsub.f32 %v3131_v34, %v3165_v46  ;;  %v3208_v59 = vand.u32 4294901760, %v25_v49  ;;  %s2254_s6 = sshll.u32 %s3001_s30, 4  ;;  %s2255_s6 = int_to_ptr.vmem [resolvable:$true] %s2254_s6 }
  0x10   :  { %2503 = vmatpush3.msra.mxu0 %v3062_v12  ;;  %3834 = vst [vmem:[#allocation13_spill] sm:$0xff] %v3184_v51  ;;  %3835 = vst [vmem:[#allocation14_spill] sm:$0xff] %v3189_v53  ;;  %2531 = vmatprep.subr.mxu1 %v3823_v3  ;;  %v3214_v61 = vsub.f32 %v27_v36, %v3162_v45  ;;  %v3217_v62 = vand.u32 4294901760, %v3180_v50  ;;  %v3221_v63 = vand.u32 4294901760, %v24_v54  ;;  %v3225_v0 = vand.u32 4294901760, %v169_v52  ;;  %s2977_s7 = scalar_lea.vmem %s2255_s6, 64  ;;  %p2982_p1 = scmp.lt.s32.totalorder %s2255_s6, %s2255_s6 }
  0x11   :  { %2504 = vmatprep.subr.mxu0 %v3823_v3  ;;  %3836 = vst [vmem:[#allocation15_spill] sm:$0xff] %v3199_v56  ;;  %3837 = vst [vmem:[#allocation16_spill] sm:$0xff] %v3202_v57  ;;  %2532 = vmatpush3.msra.mxu1 %v3160_v44  ;;  %v183_v1 = vsub.f32 %v3156_v43, %v3189_v53  ;;  %v3230_v2 = vand.u32 4294901760, %v3195_v55  ;;  %v3236_v8 = vsub.f32 %v26_v41, %v3172_v48  ;;  %vm685_vm1 = vcmask 1043456   ;;  %p2978_p0 = scmp.ne.s32.totalorder %s2255_s6, %s2977_s7  ;;  %p2983_p2 = scmp.lt.s32.totalorder %s2977_s7, %s2977_s7 }
  0x12   :  { %2505 = vmatpush3.msra.mxu0 %v3081_v17  ;;  %2533 = vmatprep.subr.mxu1 %v3823_v3  ;;  %3838 = vst [vmem:[#allocation17_spill] sm:$0xff] %v3225_v0  ;;  %v190_v9 = vsub.f32 %v3168_v47, %v3202_v57  ;;  %v3242_v13 = vand.u32 4294901760, %v23_v60  ;;  %v3246_v14 = vand.u32 4294901760, %v176_v58  ;;  %v3249_v19 = vand.u32 4294901760, %v3214_v61 }
  0x13   :  { %2506 = vmatprep.subr.mxu0 %v3823_v3  ;;  %2534 = vmatpush3.msra.mxu1 %v3184_v51  ;;  %3839 = vst [vmem:[#allocation18_spill] sm:$0xff] %v3230_v2  ;;  %v3253_v26 = vsub.f32 %v3180_v50, %v3217_v62  ;;  %v3256_v31 = vsub.f32 %v25_v49, %v3208_v59  ;;  %v3260_v32 = vand.u32 4294901760, %v22_v7  ;;  %v3264_v33 = vand.u32 4294901760, %v183_v1  ;;  %p2984_p3 = por %p2983_p2, %p2982_p1 }
  0x14   :  { %2507 = vmatpush3.msra.mxu0 %v3106_v25  ;;  %2535 = vmatprep.subr.mxu1 %v3823_v3  ;;  %3840 = vst [vmem:[#allocation19_spill] sm:$0xff] %v3246_v14  ;;  %3841 = vst [vmem:[#allocation20_spill] sm:$0xff] %v3249_v19  ;;  %v197_v36 = vsub.f32 %v3195_v55, %v3230_v2  ;;  %v3269_v39 = vand.u32 4294901760, %v3236_v8  ;;  %v3272_v41 = vsub.f32 %v24_v54, %v3221_v63  ;;  %vm681_vm2 = vcmask 31744  }
  0x15   :  { %2508 = vmatprep.subr.mxu0 %v3823_v3  ;;  %2536 = vmatpush3.msra.mxu1 %v3199_v56  ;;  %3842 = vst [vmem:[#allocation21_spill] sm:$0xff] %v3264_v33  ;;  %v3276_v42 = vand.u32 4294901760, %v190_v9  ;;  %v204_v49 = vsub.f32 %v3214_v61, %v3249_v19  ;;  %v3284_v58 = vand.u32 4294901760, %v3256_v31  ;;  %v3287_v54 = vsub.f32 %v23_v60, %v3242_v13  ;;  %p2985_p4 = pnand %p2984_p3, %p2978_p0 }
  0x16   :  { %2509 = vmatpush3.msra.mxu0 %v3115_v28  ;;  %2537 = vmatprep.subr.mxu1 %v3823_v3  ;;  %3843 = vst [vmem:[#allocation22_spill] sm:$0xff] %v3269_v39  ;;  %v3293_v1 = vand.u32 4294901760, %v197_v36  ;;  %v211_v9 = vsub.f32 %v3236_v8, %v3269_v39  ;;  %v3298_v52 = vand.u32 4294901760, %v3272_v41  ;;  %v3301_v50 = vsub.f32 %v22_v7, %v3260_v32 }
  0x17   :  { %2510 = vmatprep.subr.mxu0 %v3823_v3  ;;  %2538 = vmatpush3.msra.mxu1 %v3225_v0  ;;  %3844 = vst [vmem:[#allocation23_spill] sm:$0xff] %v3276_v42  ;;  %3845 = vst [vmem:[#allocation24_spill] sm:$0xff] %v3284_v58  ;;  %v3307_v60 = vand.u32 4294901760, %v204_v49  ;;  %v3848_v36 = vand.u32 4294901760, %v3253_v26  ;;  %v3315_v7 = vand.u32 4294901760, %v3287_v54 }
  0x18   :  { %2511 = vmatpush3.msra.mxu0 %v3134_v35  ;;  %2539 = vmatprep.subr.mxu1 %v3823_v3  ;;  %3846 = vst [vmem:[#allocation25_spill] sm:$0xff] %v3293_v1  ;;  %3847 = vst [vmem:[#allocation26_spill] sm:$0xff] %v3298_v52  ;;  %v3321_v49 = vand.u32 4294901760, %v211_v9 }
  0x19   :  { %2512 = vmatprep.subr.mxu0 %v3823_v3  ;;  %2540 = vmatpush3.msra.mxu1 %v3246_v14  ;;  %v218_v14 = vsub.f32 %v3256_v31, %v3284_v58  ;;  %3849 = vst [vmem:[#allocation27_spill] sm:$0xff] %v3315_v7  ;;  %v232_v9 = vsub.f32 %v3287_v54, %v3315_v7 }
  0x1a   :  { %2513 = vmatpush3.msra.mxu0 %v3162_v45  ;;  %2541 = vmatprep.subr.mxu1 %v3823_v3 }
  0x1b   :  { %2514 = vmatprep.subr.mxu0 %v3823_v3  ;;  %2542 = vmatpush3.msra.mxu1 %v3264_v33  ;;  %v123_v33 = vsub.f32 %v3253_v26, %v3848_v36  ;;  %v3326_v36 = vand.u32 4294901760, %v3301_v50  ;;  %v3332_v56 = vand.u32 4294901760, %v218_v14  ;;  %v3347_v14 = vand.u32 4294901760, %v232_v9 }
  0x1c   :  { %2515 = vmatpush3.msra.mxu0 %v3172_v48  ;;  %2543 = vmatprep.subr.mxu1 %v3823_v3 }
  0x1d   :  { %2516 = vmatprep.subr.mxu0 %v3823_v3  ;;  %2544 = vmatpush3.msra.mxu1 %v3276_v42  ;;  %v225_v42 = vsub.f32 %v3272_v41, %v3298_v52  ;;  %3850 = vst [vmem:[#allocation28_spill] sm:$0xff] %v3326_v36  ;;  %v124_v0 = vand.u32 4294901760, %v123_v33  ;;  %v239_v51 = vsub.f32 %v3301_v50, %v3326_v36 }
  0x1e   :  { %2517 = vmatpush3.msra.mxu0 %v3208_v59  ;;  %2545 = vmatprep.subr.mxu1 %v3823_v3 }
  0x1f   :  { %2518 = vmatprep.subr.mxu0 %v3823_v3  ;;  %2546 = vmatpush3.msra.mxu1 %v3293_v1  ;;  %v3340_v1 = vand.u32 4294901760, %v225_v42  ;;  %v3353_v33 = vand.u32 4294901760, %v239_v51  ;;  %v3851_v51 = vand.u32 4294901760, %v3253_v26 }
  0x20   :  { %2519 = vmatpush3.msra.mxu0 %v3221_v63  ;;  %2547 = vmatprep.subr.mxu1 %v3823_v3 }
  0x21   :  { %2520 = vmatprep.subr.mxu0 %v3823_v3  ;;  %2548 = vmatpush3.msra.mxu1 %v3307_v60 }
  0x22   :  { %2521 = vmatpush3.msra.mxu0 %v3242_v13  ;;  %2549 = vmatprep.subr.mxu1 %v3823_v3 }
  0x23   :  { %2522 = vmatprep.subr.mxu0 %v3823_v3  ;;  %2550 = vmatpush3.msra.mxu1 %v3321_v49 }
  0x24   :  { %2523 = vmatpush3.msra.mxu0 %v3260_v32  ;;  %2551 = vmatprep.subr.mxu1 %v3823_v3 }
  0x25   :  { %2562 = vmatprep.subr.mxu0 %v3823_v3  ;;  %2525 = vmatmul.mubr.f32.vlgmr.msra.gmra.mxu0 %v124_v0  ;;  %v38_v0 = vld [vmem:[%s3797_s4] sm:$0xf] }
  0x26   :  { %2552 = vmatpush3.msra.mxu1 %v3332_v56  ;;  %2563 = vmatpush3.msra.mxu0 %v3076_v15 }
  0x27   :  { %2553 = vmatprep.subr.mxu1 %v3823_v3  ;;  %2564 = vmatprep.subr.mxu0 %v3823_v3 }
  0x28   :  { %2554 = vmatpush3.msra.mxu1 %v3340_v1  ;;  %2565 = vmatpush3.msra.mxu0 %v3079_v16 }
  0x29   :  { %2555 = vmatprep.subr.mxu1 %v3823_v3  ;;  %2566 = vmatprep.subr.mxu0 %v3823_v3 }
  0x2a   :  { %2556 = vmatpush3.msra.mxu1 %v3347_v14  ;;  %2567 = vmatpush3.msra.mxu0 %v3084_v18 }
  0x2b   :  { %2557 = vmatprep.subr.mxu1 %v3823_v3  ;;  %2568 = vmatprep.subr.mxu0 %v3823_v3 }
  0x2c   :  { %2558 = vmatpush3.msra.mxu1 %v3353_v33  ;;  %2569 = vmatpush3.msra.mxu0 %v3091_v20 }
  0x2d   :  { %2560 = vmatmul.mubr.f32.vlgmr.msra.gmra.mxu1 %v3217_v62  ;;  %2570 = vmatprep.subr.mxu0 %v3823_v3 }
  0x2e   :  { %2597 = vmatprep.subr.mxu1 %v3823_v3  ;;  %2571 = vmatpush3.msra.mxu0 %v3094_v21 }
  0x2f   :  { %2598 = vmatpush3.msra.mxu1 %v3042_v4  ;;  %2572 = vmatprep.subr.mxu0 %v3823_v3 }
  0x30   :  { %2599 = vmatprep.subr.mxu1 %v3823_v3  ;;  %2573 = vmatpush3.msra.mxu0 %v3121_v30 }
  0x31   :  { %2600 = vmatpush3.msra.mxu1 %v3044_v5  ;;  %2574 = vmatprep.subr.mxu0 %v3823_v3 }
  0x32   :  { %2601 = vmatprep.subr.mxu1 %v3823_v3  ;;  %2575 = vmatpush3.msra.mxu0 %v3131_v34 }
  0x33   :  { %2602 = vmatpush3.msra.mxu1 %v3046_v6  ;;  %2576 = vmatprep.subr.mxu0 %v3823_v3 }
  0x34   :  { %2603 = vmatprep.subr.mxu1 %v3823_v3  ;;  %2577 = vmatpush3.msra.mxu0 %v3156_v43 }
  0x35   :  { %2604 = vmatpush3.msra.mxu1 %v3058_v10  ;;  %2578 = vmatprep.subr.mxu0 %v3823_v3 }
  0x36   :  { %2605 = vmatprep.subr.mxu1 %v3823_v3  ;;  %2579 = vmatpush3.msra.mxu0 %v3168_v47 }
  0x37   :  { %2606 = vmatpush3.msra.mxu1 %v3060_v11  ;;  %2580 = vmatprep.subr.mxu0 %v3823_v3 }
  0x38   :  { %2607 = vmatprep.subr.mxu1 %v3823_v3  ;;  %2581 = vmatpush3.msra.mxu0 %v3195_v55 }
  0x39   :  { %2608 = vmatpush3.msra.mxu1 %v3062_v12  ;;  %2582 = vmatprep.subr.mxu0 %v3823_v3 }
  0x3a   :  { %2609 = vmatprep.subr.mxu1 %v3823_v3  ;;  %2583 = vmatpush3.msra.mxu0 %v3214_v61 }
  0x3b   :  { %2610 = vmatpush3.msra.mxu1 %v3081_v17  ;;  %2584 = vmatprep.subr.mxu0 %v3823_v3 }
  0x3c   :  { %2611 = vmatprep.subr.mxu1 %v3823_v3  ;;  %2585 = vmatpush3.msra.mxu0 %v3236_v8 }
  0x3d   :  { %2612 = vmatpush3.msra.mxu1 %v3106_v25  ;;  %2586 = vmatprep.subr.mxu0 %v3823_v3 }
  0x3e   :  { %2613 = vmatprep.subr.mxu1 %v3823_v3  ;;  %2587 = vmatpush3.msra.mxu0 %v3256_v31 }
  0x3f   :  { %2614 = vmatpush3.msra.mxu1 %v3115_v28  ;;  %2588 = vmatprep.subr.mxu0 %v3823_v3 }
  0x40   :  { %2615 = vmatprep.subr.mxu1 %v3823_v3  ;;  %2589 = vmatpush3.msra.mxu0 %v3272_v41 }
  0x41   :  { %2616 = vmatpush3.msra.mxu1 %v3134_v35  ;;  %2590 = vmatprep.subr.mxu0 %v3823_v3 }
  0x42   :  { %2617 = vmatprep.subr.mxu1 %v3823_v3  ;;  %2591 = vmatpush3.msra.mxu0 %v3287_v54 }
  0x43   :  { %2618 = vmatpush3.msra.mxu1 %v3162_v45  ;;  %2592 = vmatprep.subr.mxu0 %v3823_v3 }
  0x44   :  { %2619 = vmatprep.subr.mxu1 %v3823_v3  ;;  %2593 = vmatpush3.msra.mxu0 %v3301_v50 }
  0x45   :  { %2594 = vmatprep.mubr.msk.f32.mxu0 %vm3000_vm0, %v3823_v3  ;;  %2620 = vmatpush3.msra.mxu1 %v3172_v48 }
  0x46   :  { %2595 = vmatmul.mubr.f32.vlgmr.msra.gmra.mxu0 %v3253_v26  ;;  %2621 = vmatprep.subr.mxu1 %v3823_v3  ;;  %v687_v26 = vsel %vm685_vm1, %v38_v0, 0 }
  0x47   :  { %2632 = vmatprep.subr.mxu0 %v3823_v3  ;;  %2622 = vmatpush3.msra.mxu1 %v3208_v59  ;;  %v3507_v42 = vand.u32 4294901760, %v687_v26 }
  0x48   :  { %2633 = vmatpush3.msra.mxu0 %v3098_v22  ;;  %2623 = vmatprep.subr.mxu1 %v3823_v3 }
  0x49   :  { %2634 = vmatprep.subr.mxu0 %v3823_v3  ;;  %2624 = vmatpush3.msra.mxu1 %v3221_v63  ;;  %v3510_v9 = vsub.f32 %v687_v26, %v3507_v42 }
  0x4a   :  { %2635 = vmatpush3.msra.mxu0 %v3101_v23  ;;  %2625 = vmatprep.subr.mxu1 %v3823_v3 }
  0x4b   :  { %2636 = vmatprep.subr.mxu0 %v3823_v3  ;;  %2626 = vmatpush3.msra.mxu1 %v3242_v13 }
  0x4c   :  { %2637 = vmatpush3.msra.mxu0 %v3104_v24  ;;  %2627 = vmatprep.subr.mxu1 %v3823_v3 }
  0x4d   :  { %2638 = vmatprep.subr.mxu0 %v3823_v3  ;;  %2628 = vmatpush3.msra.mxu1 %v3260_v32 }
  0x4e   :  { %2629 = vmatprep.mubr.msk.f32.mxu1 %vm3000_vm0, %v3823_v3  ;;  %2639 = vmatpush3.msra.mxu0 %v3113_v27 }
  0x4f   :  { %2630 = vmatmul.mubr.f32.vlgmr.msra.gmra.mxu1 %v3851_v51  ;;  %2640 = vmatprep.subr.mxu0 %v3823_v3 }
  0x50   :  { %2667 = vmatprep.subr.mxu1 %v3823_v3  ;;  %2641 = vmatpush3.msra.mxu0 %v3118_v29 }
  0x51   :  { %2668 = vmatpush3.msra.mxu1 %v3042_v4  ;;  %2642 = vmatprep.subr.mxu0 %v3823_v3 }
  0x52   :  { %2669 = vmatprep.subr.mxu1 %v3823_v3  ;;  %2643 = vmatpush3.msra.mxu0 %v3147_v40 }
  0x53   :  { %2670 = vmatpush3.msra.mxu1 %v3044_v5  ;;  %2644 = vmatprep.subr.mxu0 %v3823_v3 }
  0x54   :  { %2671 = vmatprep.subr.mxu1 %v3823_v3  ;;  %2645 = vmatpush3.msra.mxu0 %v3165_v46 }
  0x55   :  { %2672 = vmatpush3.msra.mxu1 %v3046_v6  ;;  %2646 = vmatprep.subr.mxu0 %v3823_v3 }
  0x56   :  { %2673 = vmatprep.subr.mxu1 %v3823_v3  ;;  %2647 = vmatpush3.msra.mxu0 %v3189_v53 }
  0x57   :  { %2674 = vmatpush3.msra.mxu1 %v3058_v10  ;;  %2648 = vmatprep.subr.mxu0 %v3823_v3 }
  0x58   :  { %2675 = vmatprep.subr.mxu1 %v3823_v3  ;;  %2649 = vmatpush3.msra.mxu0 %v3202_v57 }
  0x59   :  { %2676 = vmatpush3.msra.mxu1 %v3060_v11  ;;  %2650 = vmatprep.subr.mxu0 %v3823_v3 }
  0x5a   :  { %2677 = vmatprep.subr.mxu1 %v3823_v3  ;;  %2651 = vmatpush3.msra.mxu0 %v3230_v2 }
  0x5b   :  { %2678 = vmatpush3.msra.mxu1 %v3062_v12  ;;  %2652 = vmatprep.subr.mxu0 %v3823_v3 }
  0x5c   :  { %2679 = vmatprep.subr.mxu1 %v3823_v3  ;;  %2653 = vmatpush3.msra.mxu0 %v3249_v19 }
  0x5d   :  { %2680 = vmatpush3.msra.mxu1 %v3081_v17  ;;  %2654 = vmatprep.subr.mxu0 %v3823_v3 }
  0x5e   :  { %2681 = vmatprep.subr.mxu1 %v3823_v3  ;;  %2655 = vmatpush3.msra.mxu0 %v3269_v39 }
  0x5f   :  { %2682 = vmatpush3.msra.mxu1 %v3106_v25  ;;  %2656 = vmatprep.subr.mxu0 %v3823_v3 }
  0x60   :  { %2683 = vmatprep.subr.mxu1 %v3823_v3  ;;  %2657 = vmatpush3.msra.mxu0 %v3284_v58 }
  0x61   :  { %2684 = vmatpush3.msra.mxu1 %v3115_v28  ;;  %2658 = vmatprep.subr.mxu0 %v3823_v3 }
  0x62   :  { %2685 = vmatprep.subr.mxu1 %v3823_v3  ;;  %2659 = vmatpush3.msra.mxu0 %v3298_v52 }
  0x63   :  { %2686 = vmatpush3.msra.mxu1 %v3134_v35  ;;  %2660 = vmatprep.subr.mxu0 %v3823_v3 }
  0x64   :  { %2687 = vmatprep.subr.mxu1 %v3823_v3  ;;  %2661 = vmatpush3.msra.mxu0 %v3315_v7 }
  0x65   :  { %2688 = vmatpush3.msra.mxu1 %v3162_v45  ;;  %2662 = vmatprep.subr.mxu0 %v3823_v3 }
  0x66   :  { %2689 = vmatprep.subr.mxu1 %v3823_v3  ;;  %2663 = vmatpush3.msra.mxu0 %v3326_v36 }
  0x67   :  { %2664 = vmatprep.mubr.msk.f32.mxu0 %vm3000_vm0, %v3823_v3  ;;  %2690 = vmatpush3.msra.mxu1 %v3172_v48 }
  0x68   :  { %2665 = vmatmul.mubr.f32.vlgmr.msra.gmra.mxu0 %v3217_v62  ;;  %2691 = vmatprep.subr.mxu1 %v3823_v3 }
  0x69   :  { %2699 = vmatprep.mubr.msk.f32.mxu1 %vm3000_vm0, %v3823_v3  ;;  %2692 = vmatpush3.msra.mxu1 %v3208_v59 }
  0x6a   :  { %2702 = vmatprep.subr.mxu0 %v3823_v3  ;;  %2693 = vmatprep.subr.mxu1 %v3823_v3 }
  0x6b   :  { %2704 = vmatprep.mubr.msk.f32.mxu0 %vm3000_vm0, %v3823_v3  ;;  %2694 = vmatpush3.msra.mxu1 %v3221_v63 }
  0x6c   :  { %2695 = vmatprep.subr.mxu1 %v3823_v3  ;;  %2703 = vmatpush3.msra.mxu0 %v3507_v42 }
  0x6d   :  { %2696 = vmatpush3.msra.mxu1 %v3242_v13  ;;  %2712 = vmatprep.subr.mxu0 %v3823_v3 }
  0x6e   :  { %2697 = vmatprep.subr.mxu1 %v3823_v3 }
  0x6f   :  { %2698 = vmatpush3.msra.mxu1 %v3260_v32 }
  0x70   :  { %2700 = vmatmul.mubr.f32.vlgmr.msra.gmra.mxu1 %v3217_v62  ;;  %2707 = vmatprep.subr.mxu1 %v3823_v3  ;;  %v3515_v62 = vand.u32 4294901760, %v3510_v9 }
  0x71   :  { %2709 = vmatprep.mubr.msk.f32.mxu1 %vm3000_vm0, %v3823_v3 }
  0x72   :  { %v799_v51 = vsub.f32 %v3510_v9, %v3515_v62 }
  0x74   :  { %v3519_v36 = vand.u32 4294901760, %v799_v51 }
  0x76   :  { %3852 = vst [vmem:[#allocation29_spill] sm:$0xff] %v3519_v36  ;;  %2708 = vmatpush3.msra.mxu1 %v3519_v36 }
  0x77   :  { %2717 = vmatprep.subr.mxu1 %v3823_v3 }
  0xe5   :  { %v126_v0 = vpop.f32.mrf.mxu0 }
  0xe7   :  { %v2526_v7 = vpop.f32.mrf.mxu0 }
  0xed   :  { %v277_v26 = vpop.f32.mrf.mxu1 }
  0xee   :  { %v278_v53 = vadd.f32 %v277_v26, %v126_v0 }
  0xef   :  { %v2561_v52 = vpop.f32.mrf.mxu1 }
 0x106   :  { %v381_v58 = vpop.f32.mrf.mxu0 }
 0x107   :  { %v382_v40 = vadd.f32 %v381_v58, %v278_v53 }
 0x108   :  { %v2596_v39 = vpop.f32.mrf.mxu0 }
 0x109   :  { %v3853_v39 = vmov 0.0  }
 0x10f   :  { %v470_v19 = vpop.f32.mrf.mxu1 }
 0x110   :  { %v471_v29 = vadd.f32 %v470_v19, %v382_v40  ;;  %v3860_v40 = vld [vmem:[#allocation25_spill] sm:$0xff] }
 0x111   :  { %v2631_v2 = vpop.f32.mrf.mxu1 }
 0x128   :  { %v589_v57 = vpop.f32.mrf.mxu0 }
 0x129   :  { %v590_v27 = vadd.f32 %v589_v57, %v471_v29 }
 0x12a   :  { %v2666_v46 = vpop.f32.mrf.mxu0 }
 0x130   :  { %v676_v51 = vpop.f32.mrf.mxu1 }
 0x131   :  { %v677_v24 = vadd.f32 %v676_v51, %v590_v27  ;;  %v3857_v27 = vld [vmem:[#allocation19_spill] sm:$0xff] }
 0x132   :  { %v2701_v36 = vpop.f32.mrf.mxu1 }
 0x133   :  { %v680_v23 = vmul.f32 0.03125, %v677_v24 }
 0x135   :  { %v683_v3 = vsel %vm681_vm2, %v680_v23, 0  ;;  %v3856_v23 = vld [vmem:[#allocation17_spill] sm:$0xff] }
 0x136   :  { %v755_v7 = vand.u32 4294901760, %v683_v3 }
 0x138   :  { %v756_v22 = vsub.f32 %v683_v3, %v755_v7  ;;  %2710 = vmatmul.mubr.f32.vlgmr.msra.gmra.mxu1 %v755_v7  ;;  %v3854_v3 = vld [vmem:[#allocation13_spill] sm:$0xff] }
 0x139   :  { %2718 = vmatpush3.msra.mxu1 %v3507_v42  ;;  %2719 = vmatprep.mubr.msk.f32.mxu1 %vm3000_vm0, %v3853_v39 }
 0x13a   :  { %v757_v2 = vand.u32 4294901760, %v756_v22  ;;  %2727 = vmatprep.subr.mxu1 %v3853_v39 }
 0x13c   :  { %2720 = vmatmul.mubr.f32.vlgmr.msra.gmra.mxu1 %v757_v2  ;;  %v758_v29 = vsub.f32 %v756_v22, %v757_v2 }
 0x13d   :  { %2728 = vmatpush3.msra.mxu1 %v3507_v42  ;;  %2729 = vmatprep.mubr.msk.f32.mxu1 %vm3000_vm0, %v3853_v39 }
 0x13e   :  { %v759_v24 = vand.u32 4294901760, %v758_v29  ;;  %2767 = vmatprep.subr.mxu1 %v3853_v39 }
 0x140   :  { %2705 = vmatmul.mubr.f32.vlgmr.msra.gmra.mxu0 %v759_v24  ;;  %2730 = vmatmul.mubr.f32.vlgmr.msra.gmra.mxu1 %v755_v7 }
 0x141   :  { %2713 = vmatpush3.msra.mxu0 %v3510_v9  ;;  %2714 = vmatprep.mubr.msk.f32.mxu0 %vm3000_vm0, %v3853_v39 }
 0x142   :  { %2722 = vmatprep.subr.mxu0 %v3853_v39  ;;  %2768 = vmatpush3.msra.mxu1 %v3140_v37  ;;  %v3858_v37 = vld [vmem:[#allocation21_spill] sm:$0xff] }
 0x143   :  { %2769 = vmatprep.subr.mxu1 %v3853_v39  ;;  %2799 = vmatprep.mubr.msk.f32.mxu1 %vm3000_vm0, %v3853_v39 }
 0x144   :  { %2715 = vmatmul.mubr.f32.vlgmr.msra.gmra.mxu0 %v756_v22  ;;  %2770 = vmatpush3.msra.mxu1 %v3142_v38  ;;  %v3855_v22 = vld [vmem:[#allocation15_spill] sm:$0xff] }
 0x145   :  { %2723 = vmatpush3.msra.mxu0 %v3515_v62  ;;  %2724 = vmatprep.mubr.msk.f32.mxu0 %vm3000_vm0, %v3853_v39  ;;  %v3859_v38 = vld [vmem:[#allocation23_spill] sm:$0xff] }
 0x146   :  { %2771 = vmatprep.subr.mxu1 %v3853_v39  ;;  %2732 = vmatprep.subr.mxu0 %v3853_v39 }
 0x147   :  { %2772 = vmatpush3.msra.mxu1 %v3160_v44 }
 0x148   :  { %2725 = vmatmul.mubr.f32.vlgmr.msra.gmra.mxu0 %v755_v7  ;;  %2773 = vmatprep.subr.mxu1 %v3853_v39  ;;  %v3861_v7 = vld [vmem:[#allocation12_spill] sm:$0xff] }
 0x149   :  { %2774 = vmatpush3.msra.mxu1 %v3854_v3  ;;  %2733 = vmatpush3.msra.mxu0 %v3042_v4 }
 0x14a   :  { %2775 = vmatprep.subr.mxu1 %v3853_v39  ;;  %2734 = vmatprep.subr.mxu0 %v3853_v39 }
 0x14b   :  { %2776 = vmatpush3.msra.mxu1 %v3855_v22  ;;  %2735 = vmatpush3.msra.mxu0 %v3044_v5 }
 0x14c   :  { %2777 = vmatprep.subr.mxu1 %v3853_v39  ;;  %2736 = vmatprep.subr.mxu0 %v3853_v39 }
 0x14d   :  { %2778 = vmatpush3.msra.mxu1 %v3856_v23  ;;  %2737 = vmatpush3.msra.mxu0 %v3046_v6 }
 0x14e   :  { %2779 = vmatprep.subr.mxu1 %v3853_v39  ;;  %2738 = vmatprep.subr.mxu0 %v3853_v39 }
 0x14f   :  { %2780 = vmatpush3.msra.mxu1 %v3857_v27  ;;  %2739 = vmatpush3.msra.mxu0 %v3058_v10 }
 0x150   :  { %2781 = vmatprep.subr.mxu1 %v3853_v39  ;;  %2740 = vmatprep.subr.mxu0 %v3853_v39 }
 0x151   :  { %2782 = vmatpush3.msra.mxu1 %v3858_v37  ;;  %2741 = vmatpush3.msra.mxu0 %v3060_v11 }
 0x152   :  { %2783 = vmatprep.subr.mxu1 %v3853_v39  ;;  %2742 = vmatprep.subr.mxu0 %v3853_v39 }
 0x153   :  { %2784 = vmatpush3.msra.mxu1 %v3859_v38  ;;  %2743 = vmatpush3.msra.mxu0 %v3062_v12 }
 0x154   :  { %2785 = vmatprep.subr.mxu1 %v3853_v39  ;;  %2744 = vmatprep.subr.mxu0 %v3853_v39 }
 0x155   :  { %2786 = vmatpush3.msra.mxu1 %v3860_v40  ;;  %2745 = vmatpush3.msra.mxu0 %v3081_v17 }
 0x156   :  { %2787 = vmatprep.subr.mxu1 %v3853_v39  ;;  %2746 = vmatprep.subr.mxu0 %v3853_v39 }
 0x157   :  { %2788 = vmatpush3.msra.mxu1 %v3307_v60  ;;  %2747 = vmatpush3.msra.mxu0 %v3106_v25 }
 0x158   :  { %2789 = vmatprep.subr.mxu1 %v3853_v39  ;;  %2748 = vmatprep.subr.mxu0 %v3853_v39 }
 0x159   :  { %2790 = vmatpush3.msra.mxu1 %v3321_v49  ;;  %2749 = vmatpush3.msra.mxu0 %v3115_v28 }
 0x15a   :  { %2791 = vmatprep.subr.mxu1 %v3853_v39  ;;  %2750 = vmatprep.subr.mxu0 %v3853_v39 }
 0x15b   :  { %2792 = vmatpush3.msra.mxu1 %v3332_v56  ;;  %2751 = vmatpush3.msra.mxu0 %v3134_v35 }
 0x15c   :  { %2793 = vmatprep.subr.mxu1 %v3853_v39  ;;  %2752 = vmatprep.subr.mxu0 %v3853_v39 }
 0x15d   :  { %2794 = vmatpush3.msra.mxu1 %v3340_v1  ;;  %2753 = vmatpush3.msra.mxu0 %v3162_v45 }
 0x15e   :  { %2795 = vmatprep.subr.mxu1 %v3853_v39  ;;  %2754 = vmatprep.subr.mxu0 %v3853_v39 }
 0x15f   :  { %2796 = vmatpush3.msra.mxu1 %v3347_v14  ;;  %2755 = vmatpush3.msra.mxu0 %v3172_v48 }
 0x160   :  { %2797 = vmatprep.subr.mxu1 %v3853_v39  ;;  %2756 = vmatprep.subr.mxu0 %v3853_v39 }
 0x161   :  { %2798 = vmatpush3.msra.mxu1 %v3353_v33  ;;  %2757 = vmatpush3.msra.mxu0 %v3208_v59 }
 0x162   :  { %2837 = vmatprep.subr.mxu1 %v3853_v39  ;;  %2758 = vmatprep.subr.mxu0 %v3853_v39 }
 0x163   :  { %2759 = vmatpush3.msra.mxu0 %v3221_v63  ;;  %2764 = vmatprep.mubr.msk.f32.mxu0 %vm3000_vm0, %v3853_v39 }
 0x164   :  { %2760 = vmatprep.subr.mxu0 %v3853_v39 }
 0x165   :  { %2761 = vmatpush3.msra.mxu0 %v3242_v13 }
 0x166   :  { %2762 = vmatprep.subr.mxu0 %v3853_v39 }
 0x167   :  { %2763 = vmatpush3.msra.mxu0 %v3260_v32 }
 0x168   :  { %2802 = vmatprep.subr.mxu0 %v3853_v39 }
 0x1f8   :  { %v837_v44 = vpop.f32.mrf.mxu1 }
 0x1fa   :  { %v2711_v46 = vpop.f32.mrf.mxu1 }
 0x1fc   :  { %v985_v53 = vpop.f32.mrf.mxu1 }
 0x1fe   :  { %v2721_v56 = vpop.f32.mrf.mxu1 }
 0x200   :  { %v761_v57 = vpop.f32.mrf.mxu0  ;;  %v1131_v19 = vpop.f32.mrf.mxu1 }
 0x201   :  { %v838_v1 = vadd.f32 %v837_v44, %v761_v57 }
 0x202   :  { %v2706_v52 = vpop.f32.mrf.mxu0  ;;  %v2731_v58 = vpop.f32.mrf.mxu1 }
 0x204   :  { %v911_v60 = vpop.f32.mrf.mxu0 }
 0x205   :  { %v912_v49 = vadd.f32 %v911_v60, %v838_v1 }
 0x206   :  { %v2716_v36 = vpop.f32.mrf.mxu0 }
 0x207   :  { %v986_v14 = vadd.f32 %v985_v53, %v912_v49 }
 0x208   :  { %v1059_v33 = vpop.f32.mrf.mxu0 }
 0x209   :  { %v1060_v0 = vadd.f32 %v1059_v33, %v986_v14 }
 0x20a   :  { %v2726_v26 = vpop.f32.mrf.mxu0 }
 0x20b   :  { %v1132_v51 = vadd.f32 %v1131_v19, %v1060_v0 }
 0x20d   :  { %v3609_v2 = vsub.f32 %v3861_v7, %v1132_v51 }
 0x20f   :  { %v1136_v29 = vmul.f32 %v3609_v2, %v3609_v2 }
 0x211   :  { %v3613_v24 = vand.u32 4294901760, %v1136_v29 }
 0x213   :  { %2800 = vmatmul.mubr.f32.vlgmr.msra.gmra.mxu1 %v3613_v24  ;;  %v3617_v3 = vsub.f32 %v1136_v29, %v3613_v24 }
 0x214   :  { %2838 = vmatpush3.msra.mxu1 %v3042_v4  ;;  %2869 = vmatprep.mubr.msk.f32.mxu1 %vm3000_vm0, %v3853_v39 }
 0x215   :  { %2839 = vmatprep.subr.mxu1 %v3853_v39  ;;  %v1220_v22 = vand.u32 4294901760, %v3617_v3 }
 0x216   :  { %2840 = vmatpush3.msra.mxu1 %v3044_v5 }
 0x217   :  { %2841 = vmatprep.subr.mxu1 %v3853_v39  ;;  %v1221_v23 = vsub.f32 %v3617_v3, %v1220_v22 }
 0x218   :  { %2842 = vmatpush3.msra.mxu1 %v3046_v6 }
 0x219   :  { %2843 = vmatprep.subr.mxu1 %v3853_v39  ;;  %v1222_v27 = vand.u32 4294901760, %v1221_v23 }
 0x21a   :  { %2844 = vmatpush3.msra.mxu1 %v3058_v10 }
 0x21b   :  { %2845 = vmatprep.subr.mxu1 %v3853_v39  ;;  %2765 = vmatmul.mubr.f32.vlgmr.msra.gmra.mxu0 %v1222_v27  ;;  %v2263_v27 = vld [vmem:[%s3795_s2] ss:$0 sm:$0xff] }
 0x21c   :  { %2803 = vmatpush3.msra.mxu0 %v3076_v15  ;;  %2846 = vmatpush3.msra.mxu1 %v3060_v11  ;;  %v3868_v15 = vld [vmem:[#allocation11_spill] sm:$0xff] }
 0x21d   :  { %2804 = vmatprep.subr.mxu0 %v3853_v39  ;;  %2847 = vmatprep.subr.mxu1 %v3853_v39 }
 0x21e   :  { %2805 = vmatpush3.msra.mxu0 %v3079_v16  ;;  %2848 = vmatpush3.msra.mxu1 %v3062_v12  ;;  %v3869_v16 = vld [vmem:[#allocation14_spill] sm:$0xff] }
 0x21f   :  { %2806 = vmatprep.subr.mxu0 %v3853_v39  ;;  %2849 = vmatprep.subr.mxu1 %v3853_v39 }
 0x220   :  { %2807 = vmatpush3.msra.mxu0 %v3084_v18  ;;  %2850 = vmatpush3.msra.mxu1 %v3081_v17  ;;  %v3871_v18 = vld [vmem:[#allocation18_spill] sm:$0xff] }
 0x221   :  { %2808 = vmatprep.subr.mxu0 %v3853_v39  ;;  %2851 = vmatprep.subr.mxu1 %v3853_v39 }
 0x222   :  { %2809 = vmatpush3.msra.mxu0 %v3091_v20  ;;  %2852 = vmatpush3.msra.mxu1 %v3106_v25  ;;  %v3872_v20 = vld [vmem:[#allocation20_spill] sm:$0xff] }
 0x223   :  { %2810 = vmatprep.subr.mxu0 %v3853_v39  ;;  %2853 = vmatprep.subr.mxu1 %v3853_v39 }
 0x224   :  { %2811 = vmatpush3.msra.mxu0 %v3094_v21  ;;  %2854 = vmatpush3.msra.mxu1 %v3115_v28  ;;  %v3873_v21 = vld [vmem:[#allocation22_spill] sm:$0xff] }
 0x225   :  { %2812 = vmatprep.subr.mxu0 %v3853_v39  ;;  %2855 = vmatprep.subr.mxu1 %v3853_v39 }
 0x226   :  { %2813 = vmatpush3.msra.mxu0 %v3121_v30  ;;  %2856 = vmatpush3.msra.mxu1 %v3134_v35  ;;  %v3876_v30 = vld [vmem:[#allocation29_spill] sm:$0xff] }
 0x227   :  { %2814 = vmatprep.subr.mxu0 %v3853_v39  ;;  %2857 = vmatprep.subr.mxu1 %v3853_v39 }
 0x228   :  { %2815 = vmatpush3.msra.mxu0 %v3131_v34  ;;  %2858 = vmatpush3.msra.mxu1 %v3162_v45  ;;  %v3877_v34 = vld [vmem:[#allocation27_spill] sm:$0xff] }
 0x229   :  { %2816 = vmatprep.subr.mxu0 %v3853_v39  ;;  %2859 = vmatprep.subr.mxu1 %v3853_v39 }
 0x22a   :  { %2817 = vmatpush3.msra.mxu0 %v3156_v43  ;;  %2860 = vmatpush3.msra.mxu1 %v3172_v48 }
 0x22b   :  { %2818 = vmatprep.subr.mxu0 %v3853_v39  ;;  %2861 = vmatprep.subr.mxu1 %v3853_v39 }
 0x22c   :  { %2819 = vmatpush3.msra.mxu0 %v3168_v47  ;;  %2862 = vmatpush3.msra.mxu1 %v3208_v59 }
 0x22d   :  { %2820 = vmatprep.subr.mxu0 %v3853_v39  ;;  %2863 = vmatprep.subr.mxu1 %v3853_v39 }
 0x22e   :  { %2821 = vmatpush3.msra.mxu0 %v3195_v55  ;;  %2864 = vmatpush3.msra.mxu1 %v3221_v63 }
 0x22f   :  { %2822 = vmatprep.subr.mxu0 %v3853_v39  ;;  %2865 = vmatprep.subr.mxu1 %v3853_v39 }
 0x230   :  { %2823 = vmatpush3.msra.mxu0 %v3214_v61  ;;  %2866 = vmatpush3.msra.mxu1 %v3242_v13 }
 0x231   :  { %2824 = vmatprep.subr.mxu0 %v3853_v39  ;;  %2867 = vmatprep.subr.mxu1 %v3853_v39 }
 0x232   :  { %2825 = vmatpush3.msra.mxu0 %v3236_v8  ;;  %2868 = vmatpush3.msra.mxu1 %v3260_v32 }
 0x233   :  { %2826 = vmatprep.subr.mxu0 %v3853_v39  ;;  %2870 = vmatmul.mubr.f32.vlgmr.msra.gmra.mxu1 %v1220_v22 }
 0x234   :  { %2907 = vmatprep.subr.mxu1 %v3853_v39  ;;  %2827 = vmatpush3.msra.mxu0 %v3256_v31 }
 0x235   :  { %2908 = vmatpush3.msra.mxu1 %v3042_v4  ;;  %2828 = vmatprep.subr.mxu0 %v3853_v39  ;;  %v3862_v4 = vld [vmem:[#allocation5_spill] sm:$0xff] }
 0x236   :  { %2909 = vmatprep.subr.mxu1 %v3853_v39  ;;  %2829 = vmatpush3.msra.mxu0 %v3272_v41 }
 0x237   :  { %2910 = vmatpush3.msra.mxu1 %v3044_v5  ;;  %2830 = vmatprep.subr.mxu0 %v3853_v39  ;;  %v3863_v5 = vld [vmem:[#allocation6_spill] sm:$0xff] }
 0x238   :  { %2911 = vmatprep.subr.mxu1 %v3853_v39  ;;  %2831 = vmatpush3.msra.mxu0 %v3287_v54 }
 0x239   :  { %2912 = vmatpush3.msra.mxu1 %v3046_v6  ;;  %2832 = vmatprep.subr.mxu0 %v3853_v39  ;;  %v3864_v6 = vld [vmem:[#allocation7_spill] sm:$0xff] }
 0x23a   :  { %2913 = vmatprep.subr.mxu1 %v3853_v39  ;;  %2833 = vmatpush3.msra.mxu0 %v3301_v50 }
 0x23b   :  { %2834 = vmatprep.mubr.msk.f32.mxu0 %vm3000_vm0, %v3853_v39  ;;  %2914 = vmatpush3.msra.mxu1 %v3058_v10  ;;  %v3865_v10 = vld [vmem:[#allocation8_spill] sm:$0xff] }
 0x23c   :  { %2835 = vmatmul.mubr.f32.vlgmr.msra.gmra.mxu0 %v3617_v3  ;;  %2872 = vmatprep.subr.mxu0 %v3853_v39 }
 0x23d   :  { %2915 = vmatprep.subr.mxu1 %v3853_v39  ;;  %2873 = vmatpush3.msra.mxu0 %v3862_v4 }
 0x23e   :  { %2916 = vmatpush3.msra.mxu1 %v3060_v11  ;;  %2874 = vmatprep.subr.mxu0 %v3853_v39  ;;  %v3866_v11 = vld [vmem:[#allocation9_spill] sm:$0xff] }
 0x23f   :  { %2917 = vmatprep.subr.mxu1 %v3853_v39  ;;  %2875 = vmatpush3.msra.mxu0 %v3863_v5 }
 0x240   :  { %2918 = vmatpush3.msra.mxu1 %v3062_v12  ;;  %2876 = vmatprep.subr.mxu0 %v3853_v39  ;;  %v3867_v12 = vld [vmem:[#allocation10_spill] sm:$0xff] }
 0x241   :  { %2919 = vmatprep.subr.mxu1 %v3853_v39  ;;  %2877 = vmatpush3.msra.mxu0 %v3864_v6 }
 0x242   :  { %2920 = vmatpush3.msra.mxu1 %v3081_v17  ;;  %2878 = vmatprep.subr.mxu0 %v3853_v39  ;;  %v3870_v17 = vld [vmem:[#allocation16_spill] sm:$0xff] }
 0x243   :  { %2921 = vmatprep.subr.mxu1 %v3853_v39  ;;  %2879 = vmatpush3.msra.mxu0 %v3865_v10 }
 0x244   :  { %2922 = vmatpush3.msra.mxu1 %v3106_v25  ;;  %2880 = vmatprep.subr.mxu0 %v3853_v39  ;;  %v3874_v25 = vld [vmem:[#allocation24_spill] sm:$0xff] }
 0x245   :  { %2923 = vmatprep.subr.mxu1 %v3853_v39  ;;  %2881 = vmatpush3.msra.mxu0 %v3866_v11 }
 0x246   :  { %2924 = vmatpush3.msra.mxu1 %v3115_v28  ;;  %2882 = vmatprep.subr.mxu0 %v3853_v39  ;;  %v3875_v28 = vld [vmem:[#allocation26_spill] sm:$0xff] }
 0x247   :  { %2925 = vmatprep.subr.mxu1 %v3853_v39  ;;  %2883 = vmatpush3.msra.mxu0 %v3867_v12 }
 0x248   :  { %2926 = vmatpush3.msra.mxu1 %v3134_v35  ;;  %2884 = vmatprep.subr.mxu0 %v3853_v39  ;;  %v3878_v35 = vld [vmem:[#allocation28_spill] sm:$0xff] }
 0x249   :  { %2927 = vmatprep.subr.mxu1 %v3853_v39  ;;  %2885 = vmatpush3.msra.mxu0 %v3868_v15 }
 0x24a   :  { %2928 = vmatpush3.msra.mxu1 %v3162_v45  ;;  %2886 = vmatprep.subr.mxu0 %v3853_v39 }
 0x24b   :  { %2929 = vmatprep.subr.mxu1 %v3853_v39  ;;  %2887 = vmatpush3.msra.mxu0 %v3869_v16 }
 0x24c   :  { %2930 = vmatpush3.msra.mxu1 %v3172_v48  ;;  %2888 = vmatprep.subr.mxu0 %v3853_v39 }
 0x24d   :  { %2931 = vmatprep.subr.mxu1 %v3853_v39  ;;  %2889 = vmatpush3.msra.mxu0 %v3870_v17 }
 0x24e   :  { %2932 = vmatpush3.msra.mxu1 %v3208_v59  ;;  %2890 = vmatprep.subr.mxu0 %v3853_v39 }
 0x24f   :  { %2933 = vmatprep.subr.mxu1 %v3853_v39  ;;  %2891 = vmatpush3.msra.mxu0 %v3871_v18 }
 0x250   :  { %2934 = vmatpush3.msra.mxu1 %v3221_v63  ;;  %2892 = vmatprep.subr.mxu0 %v3853_v39 }
 0x251   :  { %2935 = vmatprep.subr.mxu1 %v3853_v39  ;;  %2893 = vmatpush3.msra.mxu0 %v3872_v20 }
 0x252   :  { %2936 = vmatpush3.msra.mxu1 %v3242_v13  ;;  %2894 = vmatprep.subr.mxu0 %v3853_v39 }
 0x253   :  { %2937 = vmatprep.subr.mxu1 %v3853_v39  ;;  %2895 = vmatpush3.msra.mxu0 %v3873_v21 }
 0x254   :  { %2938 = vmatpush3.msra.mxu1 %v3260_v32  ;;  %2939 = vmatprep.mubr.msk.f32.mxu1 %vm3000_vm0, %v3853_v39 }
 0x255   :  { %2896 = vmatprep.subr.mxu0 %v3853_v39  ;;  %2940 = vmatmul.mubr.f32.vlgmr.msra.gmra.mxu1 %v3613_v24 }
 0x256   :  { %2897 = vmatpush3.msra.mxu0 %v3874_v25  ;;  %2904 = vmatprep.mubr.msk.f32.mxu0 %vm3000_vm0, %v3853_v39 }
 0x257   :  { %2898 = vmatprep.subr.mxu0 %v3853_v39  ;;  %2947 = vmatprep.subr.mxu1 %v3853_v39 }
 0x258   :  { %2899 = vmatpush3.msra.mxu0 %v3875_v28  ;;  %2948 = vmatpush3.msra.mxu1 %v3876_v30 }
 0x259   :  { %2900 = vmatprep.subr.mxu0 %v3853_v39  ;;  %2949 = vmatprep.mubr.msk.f32.mxu1 %vm3000_vm0, %v3853_v39 }
 0x25a   :  { %2901 = vmatpush3.msra.mxu0 %v3877_v34  ;;  %2957 = vmatprep.subr.mxu1 %v3853_v39 }
 0x25b   :  { %2902 = vmatprep.subr.mxu0 %v3853_v39 }
 0x25c   :  { %2903 = vmatpush3.msra.mxu0 %v3878_v35 }
 0x25d   :  { %2905 = vmatmul.mubr.f32.vlgmr.msra.gmra.mxu0 %v3613_v24  ;;  %2942 = vmatprep.subr.mxu0 %v3853_v39 }
 0x25e   :  { %2943 = vmatpush3.msra.mxu0 %v3507_v42  ;;  %2944 = vmatprep.mubr.msk.f32.mxu0 %vm3000_vm0, %v3853_v39 }
 0x25f   :  { %2952 = vmatprep.subr.mxu0 %v3853_v39 }
 0x2d3   :  { %v1375_v43 = vpop.f32.mrf.mxu1 }
 0x2d5   :  { %v2801_v45 = vpop.f32.mrf.mxu1 }
 0x2db   :  { %v1224_v47 = vpop.f32.mrf.mxu0 }
 0x2dc   :  { %v1376_v8 = vadd.f32 %v1375_v43, %v1224_v47 }
 0x2dd   :  { %v2766_v48 = vpop.f32.mrf.mxu0 }
 0x2f3   :  { %v1568_v50 = vpop.f32.mrf.mxu1 }
 0x2f5   :  { %v2871_v55 = vpop.f32.mrf.mxu1 }
 0x2fc   :  { %v1479_v59 = vpop.f32.mrf.mxu0 }
 0x2fd   :  { %v1480_v31 = vadd.f32 %v1479_v59, %v1376_v8 }
 0x2fe   :  { %v2836_v61 = vpop.f32.mrf.mxu0 }
 0x2ff   :  { %v1569_v32 = vadd.f32 %v1568_v50, %v1480_v31 }
 0x315   :  { %v1774_v63 = vpop.f32.mrf.mxu1 }
 0x317   :  { %v2941_v13 = vpop.f32.mrf.mxu1 }
 0x31d   :  { %v1687_v41 = vpop.f32.mrf.mxu0 }
 0x31e   :  { %v1688_v54 = vadd.f32 %v1687_v41, %v1569_v32 }
 0x31f   :  { %v2906_v37 = vpop.f32.mrf.mxu0 }
 0x320   :  { %v1775_v38 = vadd.f32 %v1774_v63, %v1688_v54 }
 0x322   :  { %v1778_v40 = vmul.f32 0.03125, %v1775_v38 }
 0x324   :  { %v1779_v44 = vadd.f32 1e-05, %v1778_v40 }
 0x326   :  { %2975 = vrsqrt.f32 %v1779_v44 }
 0x333   :  { %v2976_v46 = vpop.eup %2975 }
 0x334   :  { %v1782_v53 = vsel %vm681_vm2, %v2976_v46, 0 }
 0x335   :  { %v1850_v56 = vand.u32 4294901760, %v1782_v53 }
 0x337   :  { %v1851_v57 = vsub.f32 %v1782_v53, %v1850_v56  ;;  %2950 = vmatmul.mubr.f32.vlgmr.msra.gmra.mxu1 %v1850_v56 }
 0x338   :  { %2958 = vmatpush3.msra.mxu1 %v3507_v42  ;;  %2959 = vmatprep.mubr.msk.f32.mxu1 %vm3000_vm0, %v3853_v39 }
 0x339   :  { %v1852_v19 = vand.u32 4294901760, %v1851_v57  ;;  %2967 = vmatprep.subr.mxu1 %v3853_v39 }
 0x33b   :  { %2960 = vmatmul.mubr.f32.vlgmr.msra.gmra.mxu1 %v1852_v19  ;;  %v1853_v52 = vsub.f32 %v1851_v57, %v1852_v19 }
 0x33c   :  { %2968 = vmatpush3.msra.mxu1 %v3507_v42  ;;  %2969 = vmatprep.mubr.msk.f32.mxu1 %vm3000_vm0, %v3853_v39 }
 0x33d   :  { %v1854_v58 = vand.u32 4294901760, %v1853_v52 }
 0x33f   :  { %2945 = vmatmul.mubr.f32.vlgmr.msra.gmra.mxu0 %v1854_v58  ;;  %2970 = vmatmul.mubr.f32.vlgmr.msra.gmra.mxu1 %v1850_v56 }
 0x340   :  { %2953 = vmatpush3.msra.mxu0 %v3510_v9  ;;  %2954 = vmatprep.mubr.msk.f32.mxu0 %vm3000_vm0, %v3853_v39 }
 0x341   :  { %2962 = vmatprep.subr.mxu0 %v3853_v39 }
 0x343   :  { %2955 = vmatmul.mubr.f32.vlgmr.msra.gmra.mxu0 %v1851_v57 }
 0x344   :  { %2963 = vmatpush3.msra.mxu0 %v3515_v62  ;;  %2964 = vmatprep.mubr.msk.f32.mxu0 %vm3000_vm0, %v3853_v39  ;;  %v2262_v39 = vld [vmem:[%s3794_s1] ss:$0 sm:$0xff] }
 0x347   :  { %2965 = vmatmul.mubr.f32.vlgmr.msra.gmra.mxu0 %v1850_v56 }
 0x3f7   :  { %v1932_v42 = vpop.f32.mrf.mxu1 }
 0x3f9   :  { %v2951_v1 = vpop.f32.mrf.mxu1 }
 0x3fb   :  { %v2080_v60 = vpop.f32.mrf.mxu1 }
 0x3fd   :  { %v2961_v49 = vpop.f32.mrf.mxu1 }
 0x3ff   :  { %v1856_v36 = vpop.f32.mrf.mxu0  ;;  %v2226_v14 = vpop.f32.mrf.mxu1 }
 0x400   :  { %v1933_v0 = vadd.f32 %v1932_v42, %v1856_v36 }
 0x401   :  { %v2946_v33 = vpop.f32.mrf.mxu0  ;;  %v2971_v9 = vpop.f32.mrf.mxu1 }
 0x403   :  { %v2006_v26 = vpop.f32.mrf.mxu0 }
 0x404   :  { %v2007_v51 = vadd.f32 %v2006_v26, %v1933_v0 }
 0x405   :  { %v2956_v7 = vpop.f32.mrf.mxu0 }
 0x406   :  { %v2081_v29 = vadd.f32 %v2080_v60, %v2007_v51 }
 0x407   :  { %v2154_v24 = vpop.f32.mrf.mxu0 }
 0x408   :  { %v2155_v3 = vadd.f32 %v2154_v24, %v2081_v29 }
 0x409   :  { %v2966_v62 = vpop.f32.mrf.mxu0 }
 0x40a   :  { %v2227_v22 = vadd.f32 %v2226_v14, %v2155_v3 }
 0x40c   :  { %v2232_v23 = vmul.f32 %v2227_v22, %v3609_v2 }
 0x40e   :  { %v2239_v4 = vmul.f32 %v2262_v39, %v2232_v23 }
 0x410   :  { %v2246_v5 = vadd.f32 %v2263_v27, %v2239_v4 }
 0x412   :  { %2247 = vst [vmem:[#allocation2] sm:$0xf] %v2246_v5 }
 0x413   :  { %2988 = shalt.err (!%p2985_p4)
}
 0x414   :  { %2257 = dma.vmem_to_hbm [thread:$0]  %s2255_s6, 64, %s3798_s5, [#allocation3]  }
 0x415   :  { %2997 = dma.done.wait [#allocation3], 64  }
 0x416   :  { %2998 = vsyncadd [#allocation3], 4294967232 }
 0x417   :  { %2261 = vsyncpa [#allocation3], 1 }

</bundles_post_ra>
